<compile_context>
chip_gen: v7x
topology: tpu7x:2x2x1
jax: 0.10.0
libtpu: 0.0.40
codegen_flags: <defaults>
</compile_context>

<pallas_src>
import jax
import jax.numpy as jnp
from jax import lax
from jax.experimental import pallas as pl
from jax.experimental.pallas import tpu as pltpu


def _pooler_kernel_single_pass(x_ref, w_ref, b_ref, o_ref):
    """pooled_tile = tanh(x @ W.T + b); full contraction, no accumulator.

    x_ref: [tm, H]   CLS activations
    w_ref: [tn, H]   weight tile, PyTorch [out, in] layout
    b_ref: [1,  tn]  bias tile (f32)
    o_ref: [tm, tn]  output tile
    """
    acc = lax.dot_general(
        x_ref[...], w_ref[...],
        dimension_numbers=(((1,), (1,)), ((), ())),   # x @ W.T without transpose
        preferred_element_type=jnp.float32)
    o_ref[...] = jnp.tanh(acc + b_ref[...]).astype(o_ref.dtype)


def _pooler_kernel_accum(x_ref, w_ref, b_ref, o_ref, acc_ref):
    """K-gridded fallback for very large H (f32 accumulator resident over k)."""
    k = pl.program_id(2)
    part = lax.dot_general(
        x_ref[...], w_ref[...],
        dimension_numbers=(((1,), (1,)), ((), ())),
        preferred_element_type=jnp.float32)

    @pl.when(k == 0)
    def _first():
        acc_ref[...] = part            # direct store: no zero-init read-modify-write

    @pl.when(k > 0)
    def _accumulate():
        acc_ref[...] += part

    @pl.when(k == pl.num_programs(2) - 1)
    def _epilogue():
        # Single store per (i, j) output tile (v5e has one vst slot).
        o_ref[...] = jnp.tanh(acc_ref[...] + b_ref[...]).astype(o_ref.dtype)


def _vmem_budget_bytes():
    """Per-call VMEM budget with headroom, sized to the TPU generation."""
    cap = None
    try:
        info = pltpu.get_tpu_info()
        for attr in ("vmem_capacity_bytes", "vmem_bytes", "vmem_size_bytes"):
            cap = getattr(info, attr, None)
            if cap:
                break
    except Exception:
        cap = None
    if cap is not None and cap > (64 << 20):
        return 96 << 20            # v5e / v6e: 128 MiB physical VMEM
    return 44 << 20                # v7x (64 MiB/TC) or unknown: stay conservative


def _plan_tiles(B, H, in_item, out_item, budget):
    """Static tile plan (tm, tn, tk); every tile divides its dimension."""
    # tm = B keeps grid_i == 1 so W is streamed from HBM exactly once.
    if B <= 512:
        tm = B
    else:
        tm = next((t for t in (512, 384, 256, 128, 64, 32, 16, 8) if B % t == 0), B)

    def vmem_bytes(tn, tk, with_acc):
        vm = 2 * (tm * tk + tn * tk) * in_item   # double-buffered x and W tiles
        vm += 2 * tn * 4                         # bias tile (f32), double-buffered
        vm += 2 * tm * tn * out_item             # output tile, double-buffered
        if with_acc:
            vm += tm * tn * 4                    # f32 accumulator scratch
        return vm

    # Lane-dense candidates along H: multiples of 128 that divide H, descending.
    cands = sorted((t for t in range(128, H + 1, 128) if H % t == 0), reverse=True)

    # tn: largest candidate keeping >= 2 blocks along j (both v7x TCs busy,
    # W DMA double-buffers against compute) that fits VMEM with tk = H.
    tn = None
    for t in cands:
        if H // t >= 2 and vmem_bytes(t, H, with_acc=False) <= budget:
            tn = t
            break
    if tn is None:
        for t in ([H] + cands):
            if vmem_bytes(t, H, with_acc=False) <= budget:
                tn = t
                break
    if tn is None:
        tn = cands[-1] if cands else H

    # tk: full H (single pass, no accumulator) if it fits; else largest fitting.
    if vmem_bytes(tn, H, with_acc=False) <= budget:
        tk = H
    else:
        tk = next((t for t in cands if vmem_bytes(tn, t, with_acc=True) <= budget),
                  cands[-1] if cands else H)
    return tm, tn, tk


@jax.jit
def cross_pooler(hidden_state, weight, bias):
    """hidden_state: [B, S, H]; weight: [H, H] (PyTorch [out, in]); bias: [H] -> [B, H]."""
    B, S, H = hidden_state.shape
    out_dtype = hidden_state.dtype
    in_item = jnp.dtype(hidden_state.dtype).itemsize
    o_item = jnp.dtype(out_dtype).itemsize

    # CLS-only activations: a tiny [B, H] strided slice, fused under this jit.
    # TODO(synk): could be folded into the pallas_call via a pl.Squeezed()
    # middle block dim; kept here for layout robustness across arbitrary S / H.
    x = hidden_state[:, 0, :]
    w = weight if weight.dtype == x.dtype else weight.astype(x.dtype)  # no-op when dtypes match
    b2 = bias.reshape(1, H).astype(jnp.float32)

    budget = _vmem_budget_bytes()
    tm, tn, tk = _plan_tiles(B, H, in_item, o_item, budget)
    assert B % tm == 0 and H % tn == 0 and H % tk == 0, (B, H, tm, tn, tk)

    cost = pl.CostEstimate(
        flops=2 * B * H * H,
        transcendentals=B * H,
        bytes_accessed=(B * H * in_item + H * H * in_item + H * 4 + B * H * o_item))

    if tk == H:
        # Collapsed contraction: no accumulator, no init/epilogue branches.
        grid = (B // tm, H // tn)
        return pl.pallas_call(
            _pooler_kernel_single_pass,
            out_shape=jax.ShapeDtypeStruct((B, H), out_dtype),
            grid=grid,
            in_specs=[
                pl.BlockSpec((tm, H), lambda i, j: (i, 0)),    # x  [B, H_in]
                pl.BlockSpec((tn, H), lambda i, j: (j, 0)),    # W  [H_out, H_in]
                pl.BlockSpec((1, tn), lambda i, j: (0, j)),    # b  [1, H_out]
            ],
            out_specs=pl.BlockSpec((tm, tn), lambda i, j: (i, j)),
            compiler_params=pltpu.CompilerParams(
                dimension_semantics=("parallel", "parallel"),
                vmem_limit_bytes=int(budget)),
            cost_estimate=cost,
        )(x, w, b2)

    # Fallback for very large H: grid the contraction and accumulate in VMEM.
    grid = (B // tm, H // tn, H // tk)
    return pl.pallas_call(
        _pooler_kernel_accum,
        out_shape=jax.ShapeDtypeStruct((B, H), out_dtype),
        grid=grid,
        in_specs=[
            pl.BlockSpec((tm, tk), lambda i, j, k: (i, k)),
            pl.BlockSpec((tn, tk), lambda i, j, k: (j, k)),
            pl.BlockSpec((1, tn), lambda i, j, k: (0, j)),
        ],
        out_specs=pl.BlockSpec((tm, tn), lambda i, j, k: (i, j)),
        scratch_shapes=[pltpu.VMEM((tm, tn), jnp.float32)],
        compiler_params=pltpu.CompilerParams(
            dimension_semantics=("parallel", "parallel", "arbitrary"),
            vmem_limit_bytes=int(budget)),
        cost_estimate=cost,
    )(x, w, b2)


if __name__ == "__main__":
    # Small shapes consistent with the module: batch=2, seq=8, hidden=32.
    B, S, H = 2, 8, 32

    key = jax.random.PRNGKey(0)
    k_h, k_w, k_b = jax.random.split(key, 3)

    hidden_state = jax.random.normal(k_h, (B, S, H), dtype=jnp.float32)
    # Deterministic synthetic parameters (nn.Linear(H, H): W [H, H], b [H]).
    weight = jax.random.normal(k_w, (H, H), dtype=jnp.float32) * (1.0 / jnp.sqrt(H))
    bias = jax.random.normal(k_b, (H,), dtype=jnp.float32) * 0.01

    pooled = jax.block_until_ready(cross_pooler(hidden_state, weight, bias))

    # Cross-check against plain JAX f32 reference of the PyTorch forward.
    ref = jnp.tanh(hidden_state[:, 0, :] @ weight.T + bias)
    assert pooled.shape == (B, H)
    # Default MXU matmul precision may use reduced-precision passes for f32,
    # so keep a tolerance that covers bf16-level error.
    err = float(jnp.max(jnp.abs(pooled.astype(jnp.float32) - ref)))
    assert jnp.allclose(pooled.astype(jnp.float32), ref, atol=2e-2, rtol=2e-2), err

    print("KERNEL_OK")
</pallas_src>

<mosaic_0001>
module attributes {stable_mosaic.version = 11 : i64} {
  func.func @_pooler_kernel_single_pass(%arg0: i32, %arg1: i32, %arg2: memref<2x32xf32, #tpu.memory_space<vmem>>, %arg3: memref<32x32xf32, #tpu.memory_space<vmem>>, %arg4: memref<1x32xf32, #tpu.memory_space<vmem>>, %arg5: memref<2x32xf32, #tpu.memory_space<vmem>>) attributes {dimension_semantics = [#tpu.dimension_semantics<parallel>, #tpu.dimension_semantics<parallel>], iteration_bounds = array<i64: 1, 1>, scalar_prefetch = 0 : i64, scratch_operands = 0 : i64, tpu.core_type = #tpu.core_type<tc>, window_params = [{transform_indices = @transform_0, window_bounds = array<i64: 2, 32>}, {transform_indices = @transform_1, window_bounds = array<i64: 32, 32>}, {transform_indices = @transform_2, window_bounds = array<i64: 1, 32>}, {transform_indices = @transform_3, window_bounds = array<i64: 2, 32>}]} {
    %c0 = arith.constant 0 : index
    %c0_0 = arith.constant 0 : index
    %0 = vector.load %arg2[%c0, %c0_0] : memref<2x32xf32, #tpu.memory_space<vmem>>, vector<2x32xf32>
    %c0_1 = arith.constant 0 : index
    %c0_2 = arith.constant 0 : index
    %1 = vector.load %arg3[%c0_1, %c0_2] : memref<32x32xf32, #tpu.memory_space<vmem>>, vector<32x32xf32>
    %cst = arith.constant dense<0.000000e+00> : vector<2x32xf32>
    %2 = tpu.matmul %0, %1, %cst {dimension_numbers = #tpu.dot_dimension_numbers<[1], [1], [0], [0], [0, 0, 1, 0], [], []>} : vector<2x32xf32>, vector<32x32xf32>, vector<2x32xf32> -> vector<2x32xf32>
    %c0_3 = arith.constant 0 : index
    %c0_4 = arith.constant 0 : index
    %3 = vector.load %arg4[%c0_3, %c0_4] : memref<1x32xf32, #tpu.memory_space<vmem>>, vector<1x32xf32>
    %4 = vector.broadcast %3 : vector<1x32xf32> to vector<2x32xf32>
    %5 = arith.addf %2, %4 : vector<2x32xf32>
    %6 = math.tanh %5 : vector<2x32xf32>
    %c0_5 = arith.constant 0 : index
    %c0_6 = arith.constant 0 : index
    %7 = vector.load %arg5[%c0_5, %c0_6] : memref<2x32xf32, #tpu.memory_space<vmem>>, vector<2x32xf32>
    tpu.vector_store %arg5[%c0_5, %c0_6], %6 {strides = array<i32>} : memref<2x32xf32, #tpu.memory_space<vmem>>, vector<2x32xf32>,
    return
  }
  func.func @transform_0(%arg0: i32, %arg1: i32) -> (i32, i32) {
    %c0_i32 = arith.constant 0 : i32
    %c0_i32_0 = arith.constant 0 : i32
    return %arg0, %c0_i32 : i32, i32
  }
  func.func @transform_1(%arg0: i32, %arg1: i32) -> (i32, i32) {
    %c0_i32 = arith.constant 0 : i32
    %c0_i32_0 = arith.constant 0 : i32
    return %arg1, %c0_i32 : i32, i32
  }
  func.func @transform_2(%arg0: i32, %arg1: i32) -> (i32, i32) {
    %c0_i32 = arith.constant 0 : i32
    %c0_i32_0 = arith.constant 0 : i32
    return %c0_i32, %arg1 : i32, i32
  }
  func.func @transform_3(%arg0: i32, %arg1: i32) -> (i32, i32) {
    %c0_i32 = arith.constant 0 : i32
    return %arg0, %arg1 : i32, i32
  }
}

</mosaic_0001>

<bundles_post_ra>
// kernel: cross_pooler.1
= control target key start
LH: loop header
LB: loop body
LE: loop exit
PB: predicated region body
PF: predicated region fallthrough
CT: control target
= control target key end

     0   :  { %8 = vsyncpa [#allocation3], 0  ;;  %s289_s0 = inlined_call_operand.vmem [shape: f32[2,32], index: 0, kind: input, shape index: {}]   ;;  %s290_s1 = inlined_call_operand.hbm [shape: f32[32,32], index: 1, kind: input, shape index: {}]   ;;  %s291_s2 = inlined_call_operand.vmem [shape: f32[1,32], index: 2, kind: input, shape index: {}]   ;;  %s292_s3 = inlined_call_operand.hbm [shape: f32[2,32], index: 3, kind: output, shape index: {}]  }
   0x1   :  { %9 = vsyncpa [#allocation4], 0  ;;  %s232_s12 = smov [#allocation2]   ;;  %s184_s16 = scalar_lea.hbm %s290_s1, 512 }
   0x2   :  { %s17_s13 = sshll.u32 %s232_s12, 4  ;;  %p185_p0 = scmp.ne.s32.totalorder %s290_s1, %s184_s16  ;;  %s18_s13 = int_to_ptr.vmem [resolvable:$true] %s17_s13 }
   0x3   :  { %p188_p1 = scmp.lt.u32.totalorder %s184_s16, %s290_s1 }
   0x5   :  { %p190_p2 = pnand %p188_p1, %p185_p0 }
   0x7   :  { %193 = shalt.err (!%p190_p2)
}
   0x8   :  { %s194_s21 = scalar_lea.vmem %s18_s13, 512  ;;  %p199_p4 = scmp.lt.s32.totalorder %s18_s13, %s18_s13 }
   0x9   :  { %p195_p3 = scmp.ne.s32.totalorder %s18_s13, %s194_s21  ;;  %p200_p5 = scmp.lt.s32.totalorder %s194_s21, %s194_s21 }
   0xb   :  { %p201_p6 = por %p200_p5, %p199_p4 }
   0xd   :  { %p202_p7 = pnand %p201_p6, %p195_p3 }
   0xf   :  { %205 = shalt.err (!%p202_p7)
}
  0x10   :  { %s233_s22 = smov 128   ;;  %s234_s23 = smov 8  }
  0x11   :  { %23 = dma.hbm_to_vmem [thread:$0]  %s290_s1, 512, %s18_s13, [#allocation3], %s233_s22, %s233_s22, %s234_s23  }
  0x12   :  { %228 = dma.done.wait [#allocation3], 512  }
  0x13   :  { %229 = vsyncadd [#allocation3], 4294966784  ;;  %v235_v0 = vmov 0.0|0.0   ;;  %vm236_vm0 = vmmov 0   ;;  %v237_v1 = vmov 0.0   ;;  %vm41_vm1 = vcmask 261120  }
  0x14   :  { %167 = vmatprep.subr.bf16.mxu0 %v235_v0  ;;  %164 = vmatprep.mubr.msk.f32.mxu0 %vm236_vm0, %v237_v1  ;;  %v30_v2 = vld [vmem:[#allocation2] sm:$0xff]  ;;  %v31_v3 = vld [vmem:[#allocation2 + $0x8] sm:$0xff]  ;;  %vm169_vm2 = vmpackc.low %vm41_vm1, %vm41_vm1  ;;  %s238_s29 = smov [#allocation5]   ;;  %vm128_vm3 = vcmask 254976  }
  0x15   :  { %v168_v4 = vpack.c.bf16 %v31_v3, %v30_v2  ;;  %v32_v5 = vld [vmem:[#allocation2 + $0x10] sm:$0xff]  ;;  %v33_v6 = vld [vmem:[#allocation2 + $0x18] sm:$0xff]  ;;  %v29_v8 = vld [vmem:[%s289_s0] sm:$0x3]  ;;  %s136_s30 = sshll.u32 %s238_s29, 4  ;;  %s137_s30 = int_to_ptr.vmem [resolvable:$true] %s136_s30 }
  0x16   :  { %v172_v7 = vpack.c.bf16 %v33_v6, %v32_v5  ;;  %v145_v9 = vld [vmem:[%s291_s2] ss:$0 sm:$0xff]  ;;  %s206_s4 = scalar_lea.vmem %s137_s30, 32  ;;  %p211_p9 = scmp.lt.s32.totalorder %s137_s30, %s137_s30 }
  0x17   :  { %170 = vmatpush3.bf16.xpose.msk.msra.mxu0 %vm169_vm2, %v168_v4  ;;  %p207_p8 = scmp.ne.s32.totalorder %s137_s30, %s206_s4  ;;  %p212_p10 = scmp.lt.s32.totalorder %s206_s4, %s206_s4 }
  0x18   :  { %171 = vmatprep.subr.bf16.mxu0 %v235_v0 }
  0x19   :  { %p213_p11 = por %p212_p10, %p211_p9 }
  0x1b   :  { %p214_p12 = pnand %p213_p11, %p207_p8 }
  0x1f   :  { %174 = vmatpush3.bf16.xpose.msk.msra.mxu0 %vm169_vm2, %v172_v7 }
  0x26   :  { %165 = vmatmul.mubr.msk.f32.vlgmr.msra.gmra.mrb[0].mxu0 %vm41_vm1, %v29_v8 }
  0xf9   :  { %v123_v10 = vpop.f32.mrb[0].mxu0 }
  0xfa   :  { %v124_v11 = vadd.f32 %v145_v9, %v123_v10  ;;  %v166_v12 = vpop.f32.mrb[1].mxu0 }
  0xfc   :  { %182 = vtanh.f32 %v124_v11 }
 0x106   :  { %v183_v13 = vpop.eup %182 }
 0x107   :  { %129 = vst.msk [vmem:[#allocation5] sm:$0x3] %vm128_vm3, %v183_v13 }
 0x108   :  { %217 = shalt.err (!%p214_p12)
}
 0x109   :  { %s218_s2 = scalar_lea.hbm %s292_s3, 32 }
 0x10a   :  { %p219_p13 = scmp.ne.s32.totalorder %s292_s3, %s218_s2  ;;  %p222_p0 = scmp.lt.u32.totalorder %s218_s2, %s292_s3 }
 0x10c   :  { %p224_p1 = pnand %p222_p0, %p219_p13 }
 0x10e   :  { %227 = shalt.err (!%p224_p1)
}
 0x10f   :  { %139 = dma.vmem_to_hbm [thread:$0]  %s137_s30, 32, %s292_s3, [#allocation4]  }
 0x110   :  { %230 = dma.done.wait [#allocation4], 32  }
 0x111   :  { %231 = vsyncadd [#allocation4], 4294967264 }
 0x112   :  { %143 = vsyncpa [#allocation3], 1 }
 0x113   :  { %144 = vsyncpa [#allocation4], 1 }

</bundles_post_ra>
